<compile_context>
chip_gen: v7x
topology: tpu7x:2x2x1
jax: 0.10.0
libtpu: 0.0.40
codegen_flags: <defaults>
</compile_context>

<pallas_src>
import functools

import jax
import jax.numpy as jnp
from jax.experimental import pallas as pl
from jax.experimental.pallas import tpu as pltpu

INPUT_SIZE = 32   # stand-in for StatePreprocessor.V2_SIZE
H1 = 64
H2 = 128
H3 = 64
N_ACTIONS = 4     # stand-in for ActionSpace.n

PAD = 128         # all feature dims padded to one full lane width
TILE_B = 128      # batch rows per grid step (small batches padded up to one tile)


def dqn_kernel(x_ref,
               w1_ref, b1_ref,
               w2_ref, b2_ref,
               w3_ref, b3_ref,
               w4_ref, b4_ref,
               out_ref,
               *, compute_dtype):
    """Fused 4-layer MLP forward for one (TILE_B, 128) batch tile.

    All feature dims padded to 128 lanes; dots accumulate in f32 on the MXU,
    elementwise (ReLU / sigmoid / bias add) stays in f32.
    """
    x = x_ref[...].astype(compute_dtype)                              # (TILE_B, 128)

    # Linear(INPUT_SIZE, 64) + ReLU         (padded 128 -> 128)
    h = jnp.dot(x, w1_ref[...].astype(compute_dtype),
                preferred_element_type=jnp.float32) + b1_ref[...]
    h = jnp.maximum(h, 0.0)

    # Linear(64, 128) + Sigmoid             (padded 128 -> 128)
    h = jnp.dot(h.astype(compute_dtype), w2_ref[...].astype(compute_dtype),
                preferred_element_type=jnp.float32) + b2_ref[...]
    h = jax.nn.sigmoid(h)

    # Linear(128, 64) + ReLU                (128 -> padded 128)
    h = jnp.dot(h.astype(compute_dtype), w3_ref[...].astype(compute_dtype),
                preferred_element_type=jnp.float32) + b3_ref[...]
    h = jnp.maximum(h, 0.0)

    # Linear(64, N_ACTIONS)                 (padded 128 -> padded 128, lane-dense store)
    q = jnp.dot(h.astype(compute_dtype), w4_ref[...].astype(compute_dtype),
                preferred_element_type=jnp.float32) + b4_ref[...]
    out_ref[...] = q.astype(out_ref.dtype)                            # (TILE_B, 128)


@functools.partial(jax.jit, static_argnames=("compute_dtype",))
def dqn_forward(x, padded_params, compute_dtype=jnp.float32):
    """Pallas forward. x: (B, INPUT_SIZE) f32 -> (B, N_ACTIONS) f32.

    Batch is padded up to a multiple of TILE_B and tiled over a 1-D parallel
    grid; weights/biases (already padded to 128x128 / 1x128) stay resident in
    VMEM via grid-invariant index_maps.
    """
    (w1, b1, w2, b2, w3, b3, w4, b4) = padded_params
    B = x.shape[0]
    Bp = max(TILE_B, pl.cdiv(B, TILE_B) * TILE_B)

    # Zero-pad batch rows and feature lanes once in the wrapper.
    xp = jnp.zeros((Bp, PAD), jnp.float32).at[:B, :INPUT_SIZE].set(x)

    grid = (Bp // TILE_B,)
    act_spec = pl.BlockSpec((TILE_B, PAD), lambda i: (i, 0))
    w_spec = pl.BlockSpec((PAD, PAD), lambda i: (0, 0))    # grid-invariant -> resident
    b_spec = pl.BlockSpec((1, PAD), lambda i: (0, 0))

    out_padded = pl.pallas_call(
        functools.partial(dqn_kernel, compute_dtype=compute_dtype),
        out_shape=jax.ShapeDtypeStruct((Bp, PAD), jnp.float32),
        grid=grid,
        in_specs=[act_spec,
                  w_spec, b_spec,
                  w_spec, b_spec,
                  w_spec, b_spec,
                  w_spec, b_spec],
        out_specs=act_spec,
        compiler_params=pltpu.CompilerParams(
            dimension_semantics=("parallel",)),
    )(xp, w1, b1, w2, b2, w3, b3, w4, b4)

    # Real Q-values live in the first B rows / first N_ACTIONS lanes.
    return out_padded[:B, :N_ACTIONS]


def init_params(key):
    """Deterministic PyTorch-style (Kaiming-uniform-ish) init; weights (in, out).

    Returns (logical_params, padded_params):
      logical: exact layer shapes, used by the plain-JAX reference.
      padded : zero-padded to (128,128)/(1,128) for the lane-dense kernel.
    """
    dims = [(INPUT_SIZE, H1), (H1, H2), (H2, H3), (H3, N_ACTIONS)]
    logical, padded = [], []
    for fan_in, fan_out in dims:
        kw, kb, key = jax.random.split(key, 3)
        bound = 1.0 / jnp.sqrt(float(fan_in))
        w = jax.random.uniform(kw, (fan_in, fan_out), jnp.float32, -bound, bound)
        b = jax.random.uniform(kb, (1, fan_out), jnp.float32, -bound, bound)
        logical.extend([w, b])
        wp = jnp.zeros((PAD, PAD), jnp.float32).at[:fan_in, :fan_out].set(w)
        bp = jnp.zeros((1, PAD), jnp.float32).at[:, :fan_out].set(b)
        padded.extend([wp, bp])
    return tuple(logical), tuple(padded)


def reference_forward(x, logical_params):
    """Plain-JAX reference for a sanity check (unpadded math)."""
    (w1, b1, w2, b2, w3, b3, w4, b4) = logical_params
    h = jnp.maximum(x @ w1 + b1, 0.0)
    h = jax.nn.sigmoid(h @ w2 + b2)
    h = jnp.maximum(h @ w3 + b3, 0.0)
    return h @ w4 + b4


if __name__ == "__main__":
    key = jax.random.PRNGKey(0)
    kx, kp = jax.random.split(key)

    # The PyTorch forward expects 1 x INPUT_SIZE; we use a small batch of 2.
    # (The kernel itself tiles arbitrarily large batches over a parallel grid.)
    B = 2
    x = jax.random.normal(kx, (B, INPUT_SIZE), jnp.float32)
    logical_params, padded_params = init_params(kp)

    q = dqn_forward(x, padded_params)
    jax.block_until_ready(q)

    q_ref = reference_forward(x, logical_params)
    assert q.shape == (B, N_ACTIONS)
    assert jnp.allclose(q, q_ref, atol=1e-5, rtol=1e-5)

    # Optional bf16-MXU path (for v6e/v7x); looser tolerance expected.
    q_bf16 = dqn_forward(x, padded_params, compute_dtype=jnp.bfloat16)
    jax.block_until_ready(q_bf16)
    assert jnp.allclose(q_bf16, q_ref, atol=5e-2, rtol=5e-2)

    print("KERNEL_OK")
</pallas_src>

<mosaic_0001>
module attributes {stable_mosaic.version = 11 : i64} {
  func.func @dqn_kernel(%arg0: i32, %arg1: memref<128x128xf32, #tpu.memory_space<vmem>>, %arg2: memref<128x128xf32, #tpu.memory_space<vmem>>, %arg3: memref<1x128xf32, #tpu.memory_space<vmem>>, %arg4: memref<128x128xf32, #tpu.memory_space<vmem>>, %arg5: memref<1x128xf32, #tpu.memory_space<vmem>>, %arg6: memref<128x128xf32, #tpu.memory_space<vmem>>, %arg7: memref<1x128xf32, #tpu.memory_space<vmem>>, %arg8: memref<128x128xf32, #tpu.memory_space<vmem>>, %arg9: memref<1x128xf32, #tpu.memory_space<vmem>>, %arg10: memref<128x128xf32, #tpu.memory_space<vmem>>) attributes {dimension_semantics = [#tpu.dimension_semantics<parallel>], iteration_bounds = array<i64: 1>, scalar_prefetch = 0 : i64, scratch_operands = 0 : i64, tpu.core_type = #tpu.core_type<tc>, window_params = [{transform_indices = @transform_0, window_bounds = array<i64: 128, 128>}, {pipeline_mode = #tpu.pipeline_mode<synchronous>, transform_indices = @transform_1, window_bounds = array<i64: 128, 128>}, {pipeline_mode = #tpu.pipeline_mode<synchronous>, transform_indices = @transform_2, window_bounds = array<i64: 1, 128>}, {pipeline_mode = #tpu.pipeline_mode<synchronous>, transform_indices = @transform_3, window_bounds = array<i64: 128, 128>}, {pipeline_mode = #tpu.pipeline_mode<synchronous>, transform_indices = @transform_4, window_bounds = array<i64: 1, 128>}, {pipeline_mode = #tpu.pipeline_mode<synchronous>, transform_indices = @transform_5, window_bounds = array<i64: 128, 128>}, {pipeline_mode = #tpu.pipeline_mode<synchronous>, transform_indices = @transform_6, window_bounds = array<i64: 1, 128>}, {pipeline_mode = #tpu.pipeline_mode<synchronous>, transform_indices = @transform_7, window_bounds = array<i64: 128, 128>}, {pipeline_mode = #tpu.pipeline_mode<synchronous>, transform_indices = @transform_8, window_bounds = array<i64: 1, 128>}, {transform_indices = @transform_9, window_bounds = array<i64: 128, 128>}]} {
    %c0 = arith.constant 0 : index
    %c0_0 = arith.constant 0 : index
    %0 = vector.load %arg1[%c0, %c0_0] : memref<128x128xf32, #tpu.memory_space<vmem>>, vector<128x128xf32>
    %c0_1 = arith.constant 0 : index
    %c0_2 = arith.constant 0 : index
    %1 = vector.load %arg2[%c0_1, %c0_2] : memref<128x128xf32, #tpu.memory_space<vmem>>, vector<128x128xf32>
    %cst = arith.constant dense<0.000000e+00> : vector<128x128xf32>
    %2 = tpu.matmul %0, %1, %cst {dimension_numbers = #tpu.dot_dimension_numbers<[1], [0], [0], [1], [0, 0, 1, 1], [], []>} : vector<128x128xf32>, vector<128x128xf32>, vector<128x128xf32> -> vector<128x128xf32>
    %c0_3 = arith.constant 0 : index
    %c0_4 = arith.constant 0 : index
    %3 = vector.load %arg3[%c0_3, %c0_4] : memref<1x128xf32, #tpu.memory_space<vmem>>, vector<1x128xf32>
    %4 = vector.broadcast %3 : vector<1x128xf32> to vector<128x128xf32>
    %5 = arith.addf %2, %4 : vector<128x128xf32>
    %cst_5 = arith.constant 0.000000e+00 : f32
    %6 = vector.broadcast %cst_5 : f32 to vector<128x128xf32>
    %7 = arith.maximumf %5, %6 : vector<128x128xf32>
    %c0_6 = arith.constant 0 : index
    %c0_7 = arith.constant 0 : index
    %8 = vector.load %arg4[%c0_6, %c0_7] : memref<128x128xf32, #tpu.memory_space<vmem>>, vector<128x128xf32>
    %cst_8 = arith.constant dense<0.000000e+00> : vector<128x128xf32>
    %9 = tpu.matmul %7, %8, %cst_8 {dimension_numbers = #tpu.dot_dimension_numbers<[1], [0], [0], [1], [0, 0, 1, 1], [], []>} : vector<128x128xf32>, vector<128x128xf32>, vector<128x128xf32> -> vector<128x128xf32>
    %c0_9 = arith.constant 0 : index
    %c0_10 = arith.constant 0 : index
    %10 = vector.load %arg5[%c0_9, %c0_10] : memref<1x128xf32, #tpu.memory_space<vmem>>, vector<1x128xf32>
    %11 = vector.broadcast %10 : vector<1x128xf32> to vector<128x128xf32>
    %12 = arith.addf %9, %11 : vector<128x128xf32>
    %13 = arith.negf %12 : vector<128x128xf32>
    %14 = math.exp %13 : vector<128x128xf32>
    %cst_11 = arith.constant 1.000000e+00 : f32
    %15 = vector.broadcast %cst_11 : f32 to vector<128x128xf32>
    %16 = arith.addf %15, %14 : vector<128x128xf32>
    %17 = arith.divf %15, %16 : vector<128x128xf32>
    %c0_12 = arith.constant 0 : index
    %c0_13 = arith.constant 0 : index
    %18 = vector.load %arg6[%c0_12, %c0_13] : memref<128x128xf32, #tpu.memory_space<vmem>>, vector<128x128xf32>
    %cst_14 = arith.constant dense<0.000000e+00> : vector<128x128xf32>
    %19 = tpu.matmul %17, %18, %cst_14 {dimension_numbers = #tpu.dot_dimension_numbers<[1], [0], [0], [1], [0, 0, 1, 1], [], []>} : vector<128x128xf32>, vector<128x128xf32>, vector<128x128xf32> -> vector<128x128xf32>
    %c0_15 = arith.constant 0 : index
    %c0_16 = arith.constant 0 : index
    %20 = vector.load %arg7[%c0_15, %c0_16] : memref<1x128xf32, #tpu.memory_space<vmem>>, vector<1x128xf32>
    %21 = vector.broadcast %20 : vector<1x128xf32> to vector<128x128xf32>
    %22 = arith.addf %19, %21 : vector<128x128xf32>
    %cst_17 = arith.constant 0.000000e+00 : f32
    %23 = vector.broadcast %cst_17 : f32 to vector<128x128xf32>
    %24 = arith.maximumf %22, %23 : vector<128x128xf32>
    %c0_18 = arith.constant 0 : index
    %c0_19 = arith.constant 0 : index
    %25 = vector.load %arg8[%c0_18, %c0_19] : memref<128x128xf32, #tpu.memory_space<vmem>>, vector<128x128xf32>
    %cst_20 = arith.constant dense<0.000000e+00> : vector<128x128xf32>
    %26 = tpu.matmul %24, %25, %cst_20 {dimension_numbers = #tpu.dot_dimension_numbers<[1], [0], [0], [1], [0, 0, 1, 1], [], []>} : vector<128x128xf32>, vector<128x128xf32>, vector<128x128xf32> -> vector<128x128xf32>
    %c0_21 = arith.constant 0 : index
    %c0_22 = arith.constant 0 : index
    %27 = vector.load %arg9[%c0_21, %c0_22] : memref<1x128xf32, #tpu.memory_space<vmem>>, vector<1x128xf32>
    %28 = vector.broadcast %27 : vector<1x128xf32> to vector<128x128xf32>
    %29 = arith.addf %26, %28 : vector<128x128xf32>
    %c0_23 = arith.constant 0 : index
    %c0_24 = arith.constant 0 : index
    %30 = vector.load %arg10[%c0_23, %c0_24] : memref<128x128xf32, #tpu.memory_space<vmem>>, vector<128x128xf32>
    tpu.vector_store %arg10[%c0_23, %c0_24], %29 {strides = array<i32>} : memref<128x128xf32, #tpu.memory_space<vmem>>, vector<128x128xf32>,
    return
  }
  func.func @transform_0(%arg0: i32) -> (i32, i32) {
    %c0_i32 = arith.constant 0 : i32
    %c0_i32_0 = arith.constant 0 : i32
    return %arg0, %c0_i32 : i32, i32
  }
  func.func @transform_1(%arg0: i32) -> (i32, i32) {
    %c0_i32 = arith.constant 0 : i32
    %c0_i32_0 = arith.constant 0 : i32
    %c0_i32_1 = arith.constant 0 : i32
    return %c0_i32, %c0_i32_0 : i32, i32
  }
  func.func @transform_2(%arg0: i32) -> (i32, i32) {
    %c0_i32 = arith.constant 0 : i32
    %c0_i32_0 = arith.constant 0 : i32
    %c0_i32_1 = arith.constant 0 : i32
    return %c0_i32, %c0_i32_0 : i32, i32
  }
  func.func @transform_3(%arg0: i32) -> (i32, i32) {
    %c0_i32 = arith.constant 0 : i32
    %c0_i32_0 = arith.constant 0 : i32
    %c0_i32_1 = arith.constant 0 : i32
    return %c0_i32, %c0_i32_0 : i32, i32
  }
  func.func @transform_4(%arg0: i32) -> (i32, i32) {
    %c0_i32 = arith.constant 0 : i32
    %c0_i32_0 = arith.constant 0 : i32
    %c0_i32_1 = arith.constant 0 : i32
    return %c0_i32, %c0_i32_0 : i32, i32
  }
  func.func @transform_5(%arg0: i32) -> (i32, i32) {
    %c0_i32 = arith.constant 0 : i32
    %c0_i32_0 = arith.constant 0 : i32
    %c0_i32_1 = arith.constant 0 : i32
    return %c0_i32, %c0_i32_0 : i32, i32
  }
  func.func @transform_6(%arg0: i32) -> (i32, i32) {
    %c0_i32 = arith.constant 0 : i32
    %c0_i32_0 = arith.constant 0 : i32
    %c0_i32_1 = arith.constant 0 : i32
    return %c0_i32, %c0_i32_0 : i32, i32
  }
  func.func @transform_7(%arg0: i32) -> (i32, i32) {
    %c0_i32 = arith.constant 0 : i32
    %c0_i32_0 = arith.constant 0 : i32
    %c0_i32_1 = arith.constant 0 : i32
    return %c0_i32, %c0_i32_0 : i32, i32
  }
  func.func @transform_8(%arg0: i32) -> (i32, i32) {
    %c0_i32 = arith.constant 0 : i32
    %c0_i32_0 = arith.constant 0 : i32
    %c0_i32_1 = arith.constant 0 : i32
    return %c0_i32, %c0_i32_0 : i32, i32
  }
  func.func @transform_9(%arg0: i32) -> (i32, i32) {
    %c0_i32 = arith.constant 0 : i32
    %c0_i32_0 = arith.constant 0 : i32
    return %arg0, %c0_i32 : i32, i32
  }
}

</mosaic_0001>

<bundles_post_ra>
// kernel: dqn_forward.1
= control target key start
LH: loop header
LB: loop body
LE: loop exit
PB: predicated region body
PF: predicated region fallthrough
CT: control target
= control target key end

     0   :  { %14 = vsyncpa [#allocation3], 0  ;;  %s1831_s0 = inlined_call_operand.vmem [shape: f32[128,128], index: 0, kind: input, shape index: {}]   ;;  %s1832_s1 = inlined_call_operand.vmem [shape: f32[128,128], index: 1, kind: input, shape index: {}]   ;;  %s1833_s2 = inlined_call_operand.vmem [shape: f32[1,128], index: 2, kind: input, shape index: {}]   ;;  %s1834_s3 = inlined_call_operand.hbm [shape: f32[128,128], index: 3, kind: input, shape index: {}]   ;;  %s1835_s4 = inlined_call_operand.vmem [shape: f32[1,128], index: 4, kind: input, shape index: {}]   ;;  %s1836_s5 = inlined_call_operand.hbm [shape: f32[128,128], index: 5, kind: input, shape index: {}]   ;;  %s1837_s6 = inlined_call_operand.vmem [shape: f32[1,128], index: 6, kind: input, shape index: {}]   ;;  %s1838_s7 = inlined_call_operand.hbm [shape: f32[128,128], index: 7, kind: input, shape index: {}]   ;;  %s1839_s8 = inlined_call_operand.vmem [shape: f32[1,128], index: 8, kind: input, shape index: {}]   ;;  %s1840_s9 = inlined_call_operand.vmem [shape: f32[128,128], index: 9, kind: output, shape index: {}]  }
   0x1   :  { %15 = vsyncpa [#allocation5], 0  ;;  %s1550_s30 = smov [#allocation4]   ;;  %s1551_s11 = smov [#allocation2]  }
   0x2   :  { %s41_s10 = sshll.u32 %s1550_s30, 4  ;;  %s27_s12 = sshll.u32 %s1551_s11, 4  ;;  %s42_s10 = int_to_ptr.vmem [resolvable:$true] %s41_s10  ;;  %s1605_s12 = int_to_ptr.vmem [resolvable:$true] %s27_s12 }
   0x3   :  { %s1480_s15 = scalar_lea.hbm %s1836_s5, 2048 }
   0x4   :  { %p1481_p0 = scmp.ne.s32.totalorder %s1836_s5, %s1480_s15  ;;  %p1484_p1 = scmp.lt.u32.totalorder %s1480_s15, %s1836_s5 }
   0x6   :  { %p1486_p2 = pnand %p1484_p1, %p1481_p0 }
   0x8   :  { %1489 = shalt.err (!%p1486_p2)
}
   0x9   :  { %s1490_s20 = scalar_lea.vmem %s42_s10, 2048  ;;  %p1495_p4 = scmp.lt.s32.totalorder %s42_s10, %s42_s10 }
   0xa   :  { %p1491_p3 = scmp.ne.s32.totalorder %s42_s10, %s1490_s20  ;;  %p1496_p5 = scmp.lt.s32.totalorder %s1490_s20, %s1490_s20 }
   0xc   :  { %p1497_p6 = por %p1496_p5, %p1495_p4 }
   0xe   :  { %p1498_p7 = pnand %p1497_p6, %p1491_p3 }
  0x10   :  { %1501 = shalt.err (!%p1498_p7)
}
  0x11   :  { %s1552_s21 = smov 128   ;;  %s1553_s22 = smov 8  }
  0x12   :  { %47 = dma.hbm_to_vmem [thread:$0]  %s1836_s5, 2048, %s42_s10, [#allocation5], %s1552_s21, %s1552_s21, %s1553_s22  }
  0x13   :  { %s1502_s27 = scalar_lea.hbm %s1834_s3, 2048 }
  0x14   :  { %p1503_p8 = scmp.ne.s32.totalorder %s1834_s3, %s1502_s27  ;;  %p1506_p9 = scmp.lt.u32.totalorder %s1502_s27, %s1834_s3 }
  0x16   :  { %p1508_p10 = pnand %p1506_p9, %p1503_p8 }
  0x18   :  { %1511 = shalt.err (!%p1508_p10)
}
  0x19   :  { %s1512_s13 = scalar_lea.vmem %s1605_s12, 2048  ;;  %p1517_p12 = scmp.lt.s32.totalorder %s1605_s12, %s1605_s12 }
  0x1a   :  { %p1513_p11 = scmp.ne.s32.totalorder %s1605_s12, %s1512_s13  ;;  %p1518_p13 = scmp.lt.s32.totalorder %s1512_s13, %s1512_s13 }
  0x1c   :  { %p1519_p0 = por %p1518_p13, %p1517_p12 }
  0x1e   :  { %p1520_p1 = pnand %p1519_p0, %p1513_p11 }
  0x20   :  { %1523 = shalt.err (!%p1520_p1)
}
  0x21   :  { %33 = dma.hbm_to_vmem [thread:$0]  %s1834_s3, 2048, %s1605_s12, [#allocation3], %s1552_s21, %s1552_s21, %s1553_s22  }
  0x22   :  { %s1554_s14 = smov [#allocation6]   ;;  %s1524_s18 = scalar_lea.hbm %s1838_s7, 2048 }
  0x23   :  { %s55_s15 = sshll.u32 %s1554_s14, 4  ;;  %p1525_p2 = scmp.ne.s32.totalorder %s1838_s7, %s1524_s18  ;;  %s56_s15 = int_to_ptr.vmem [resolvable:$true] %s55_s15 }
  0x24   :  { %p1528_p3 = scmp.lt.u32.totalorder %s1524_s18, %s1838_s7 }
  0x26   :  { %p1530_p4 = pnand %p1528_p3, %p1525_p2 }
  0x28   :  { %1533 = shalt.err (!%p1530_p4)
}
  0x29   :  { %s1534_s25 = scalar_lea.vmem %s56_s15, 2048  ;;  %p1539_p6 = scmp.lt.s32.totalorder %s56_s15, %s56_s15 }
  0x2a   :  { %p1535_p5 = scmp.ne.s32.totalorder %s56_s15, %s1534_s25  ;;  %p1540_p7 = scmp.lt.s32.totalorder %s1534_s25, %s1534_s25 }
  0x2c   :  { %p1541_p8 = por %p1540_p7, %p1539_p6 }
  0x2e   :  { %p1542_p9 = pnand %p1541_p8, %p1535_p5 }
  0x30   :  { %1545 = shalt.err (!%p1542_p9)
}
  0x31   :  { %61 = dma.hbm_to_vmem [thread:$0]  %s1838_s7, 2048, %s56_s15, [#allocation5], %s1552_s21, %s1552_s21, %s1553_s22  }
  0x32   :  { %1546 = dma.done.wait [#allocation3], 2048  }
  0x33   :  { %1547 = vsyncadd [#allocation3], 4294965248 }
  0x34   :  { %1548 = dma.done.wait [#allocation5], 4096  }
  0x35   :  { %1549 = vsyncadd [#allocation5], 4294963200  ;;  %v89_v0 = vld [vmem:[%s1832_s1] sm:$0xff]  ;;  %v90_v1 = vld [vmem:[%s1832_s1 + $0x8] sm:$0xff] }
  0x36   :  { %v91_v2 = vld [vmem:[%s1832_s1 + $0x10] sm:$0xff]  ;;  %v1283_v3 = vpack.c.bf16 %v90_v1, %v89_v0  ;;  %v92_v4 = vld [vmem:[%s1832_s1 + $0x18] sm:$0xff]  ;;  %v93_v6 = vld [vmem:[%s1832_s1 + $0x20] sm:$0xff] }
  0x37   :  { %v1287_v5 = vpack.c.bf16 %v92_v4, %v91_v2  ;;  %v94_v7 = vld [vmem:[%s1832_s1 + $0x28] sm:$0xff]  ;;  %v73_v9 = vld [vmem:[%s1831_s0] sm:$0xff]  ;;  %v95_v10 = vld [vmem:[%s1832_s1 + $0x30] sm:$0xff] }
  0x38   :  { %1284 = vmatprep.subr.bf16.mxu0 %v1283_v3  ;;  %v1291_v8 = vpack.c.bf16 %v94_v7, %v93_v6  ;;  %v96_v11 = vld [vmem:[%s1832_s1 + $0x38] sm:$0xff]  ;;  %1091 = vmatprep.mubr.f32.mxu0 %v73_v9  ;;  %v97_v13 = vld [vmem:[%s1832_s1 + $0x40] sm:$0xff]  ;;  %v98_v14 = vld [vmem:[%s1832_s1 + $0x48] sm:$0xff] }
  0x39   :  { %1286 = vmatpush3.bf16.msra.mxu0 %v1283_v3  ;;  %v1295_v12 = vpack.c.bf16 %v96_v11, %v95_v10  ;;  %v273_v15 = vld [vmem:[#allocation2] sm:$0xff]  ;;  %v274_v16 = vld [vmem:[#allocation2 + $0x8] sm:$0xff]  ;;  %v275_v17 = vld [vmem:[#allocation2 + $0x10] sm:$0xff]  ;;  %v1299_v21 = vpack.c.bf16 %v98_v14, %v97_v13 }
  0x3a   :  { %1288 = vmatprep.subr.bf16.mxu0 %v1287_v5  ;;  %v276_v18 = vld [vmem:[#allocation2 + $0x18] sm:$0xff]  ;;  %v1315_v19 = vpack.c.bf16 %v274_v16, %v273_v15  ;;  %v277_v22 = vld [vmem:[#allocation2 + $0x20] sm:$0xff]  ;;  %v278_v23 = vld [vmem:[#allocation2 + $0x28] sm:$0xff] }
  0x3b   :  { %v1319_v20 = vpack.c.bf16 %v276_v18, %v275_v17  ;;  %v99_v24 = vld [vmem:[%s1832_s1 + $0x50] sm:$0xff]  ;;  %v100_v25 = vld [vmem:[%s1832_s1 + $0x58] sm:$0xff]  ;;  %v1323_v26 = vpack.c.bf16 %v278_v23, %v277_v22  ;;  %v101_v30 = vld [vmem:[%s1832_s1 + $0x60] sm:$0xff] }
  0x3c   :  { %1316 = vmatprep.subr.bf16.mxu1 %v1315_v19  ;;  %v1303_v27 = vpack.c.bf16 %v100_v25, %v99_v24  ;;  %v279_v28 = vld [vmem:[#allocation2 + $0x30] sm:$0xff]  ;;  %v280_v29 = vld [vmem:[#allocation2 + $0x38] sm:$0xff]  ;;  %v102_v31 = vld [vmem:[%s1832_s1 + $0x68] sm:$0xff] }
  0x3d   :  { %1290 = vmatpush3.bf16.msra.mxu0 %v1287_v5  ;;  %1318 = vmatpush3.bf16.msra.mxu1 %v1315_v19  ;;  %v1327_v32 = vpack.c.bf16 %v280_v29, %v279_v28  ;;  %v1307_v33 = vpack.c.bf16 %v102_v31, %v101_v30  ;;  %v281_v34 = vld [vmem:[#allocation2 + $0x40] sm:$0xff]  ;;  %v282_v35 = vld [vmem:[#allocation2 + $0x48] sm:$0xff]  ;;  %v103_v36 = vld [vmem:[%s1832_s1 + $0x70] sm:$0xff] }
  0x3e   :  { %1292 = vmatprep.subr.bf16.mxu0 %v1291_v8  ;;  %1320 = vmatprep.subr.bf16.mxu1 %v1319_v20  ;;  %v104_v37 = vld [vmem:[%s1832_s1 + $0x78] sm:$0xff]  ;;  %v1331_v38 = vpack.c.bf16 %v282_v35, %v281_v34  ;;  %v283_v40 = vld [vmem:[#allocation2 + $0x50] sm:$0xff]  ;;  %v285_v43 = vld [vmem:[#allocation2 + $0x60] sm:$0xff] }
  0x3f   :  { %v1311_v39 = vpack.c.bf16 %v104_v37, %v103_v36  ;;  %v284_v41 = vld [vmem:[#allocation2 + $0x58] sm:$0xff]  ;;  %v286_v44 = vld [vmem:[#allocation2 + $0x68] sm:$0xff]  ;;  %v75_v47 = vld [vmem:[%s1831_s0 + $0x10] sm:$0xff] }
  0x40   :  { %v1335_v42 = vpack.c.bf16 %v284_v41, %v283_v40  ;;  %v74_v45 = vld [vmem:[%s1831_s0 + $0x8] sm:$0xff]  ;;  %v1339_v46 = vpack.c.bf16 %v286_v44, %v285_v43  ;;  %v76_v48 = vld [vmem:[%s1831_s0 + $0x18] sm:$0xff]  ;;  %v77_v49 = vld [vmem:[%s1831_s0 + $0x20] sm:$0xff] }
  0x41   :  { %1294 = vmatpush3.bf16.msra.mxu0 %v1291_v8  ;;  %1322 = vmatpush3.bf16.msra.mxu1 %v1319_v20  ;;  %v78_v50 = vld [vmem:[%s1831_s0 + $0x28] sm:$0xff]  ;;  %v79_v51 = vld [vmem:[%s1831_s0 + $0x30] sm:$0xff]  ;;  %v80_v52 = vld [vmem:[%s1831_s0 + $0x38] sm:$0xff] }
  0x42   :  { %1296 = vmatprep.subr.bf16.mxu0 %v1295_v12  ;;  %1324 = vmatprep.subr.bf16.mxu1 %v1323_v26  ;;  %v81_v53 = vld [vmem:[%s1831_s0 + $0x40] sm:$0xff]  ;;  %v82_v54 = vld [vmem:[%s1831_s0 + $0x48] sm:$0xff]  ;;  %v83_v55 = vld [vmem:[%s1831_s0 + $0x50] sm:$0xff] }
  0x43   :  { %v84_v56 = vld [vmem:[%s1831_s0 + $0x58] sm:$0xff]  ;;  %v85_v57 = vld [vmem:[%s1831_s0 + $0x60] sm:$0xff]  ;;  %v86_v58 = vld [vmem:[%s1831_s0 + $0x68] sm:$0xff] }
  0x44   :  { %v87_v59 = vld [vmem:[%s1831_s0 + $0x70] sm:$0xff]  ;;  %v88_v60 = vld [vmem:[%s1831_s0 + $0x78] sm:$0xff]  ;;  %v537_v0 = vld [vmem:[#allocation4] sm:$0xff] }
  0x45   :  { %1298 = vmatpush3.bf16.msra.mxu0 %v1295_v12  ;;  %1326 = vmatpush3.bf16.msra.mxu1 %v1323_v26  ;;  %v287_v61 = vld [vmem:[#allocation2 + $0x70] sm:$0xff]  ;;  %v288_v62 = vld [vmem:[#allocation2 + $0x78] sm:$0xff]  ;;  %v538_v1 = vld [vmem:[#allocation4 + $0x8] sm:$0xff] }
  0x46   :  { %1300 = vmatprep.subr.bf16.mxu0 %v1299_v21  ;;  %1328 = vmatprep.subr.bf16.mxu1 %v1327_v32  ;;  %v1343_v63 = vpack.c.bf16 %v288_v62, %v287_v61  ;;  %v1347_v2 = vpack.c.bf16 %v538_v1, %v537_v0  ;;  %v911_v3 = vld [vmem:[%s1833_s2] ss:$0 sm:$0xff]  ;;  %v546_v62 = vld [vmem:[#allocation4 + $0x48] sm:$0xff]  ;;  %v547_v0 = vld [vmem:[#allocation4 + $0x50] sm:$0xff] }
  0x47   :  { %v545_v61 = vld [vmem:[#allocation4 + $0x40] sm:$0xff]  ;;  %v548_v1 = vld [vmem:[#allocation4 + $0x58] sm:$0xff] }
  0x49   :  { %1302 = vmatpush3.bf16.msra.mxu0 %v1299_v21  ;;  %1330 = vmatpush3.bf16.msra.mxu1 %v1327_v32 }
  0x4a   :  { %1304 = vmatprep.subr.bf16.mxu0 %v1303_v27  ;;  %1332 = vmatprep.subr.bf16.mxu1 %v1331_v38 }
  0x4d   :  { %1306 = vmatpush3.bf16.msra.mxu0 %v1303_v27  ;;  %1334 = vmatpush3.bf16.msra.mxu1 %v1331_v38 }
  0x4e   :  { %1308 = vmatprep.subr.bf16.mxu0 %v1307_v33  ;;  %1336 = vmatprep.subr.bf16.mxu1 %v1335_v42 }
  0x51   :  { %1310 = vmatpush3.bf16.msra.mxu0 %v1307_v33  ;;  %1338 = vmatpush3.bf16.msra.mxu1 %v1335_v42 }
  0x52   :  { %1312 = vmatprep.subr.bf16.mxu0 %v1311_v39  ;;  %1340 = vmatprep.subr.bf16.mxu1 %v1339_v46 }
  0x55   :  { %1314 = vmatpush3.bf16.msra.mxu0 %v1311_v39  ;;  %1342 = vmatpush3.bf16.msra.mxu1 %v1339_v46 }
  0x56   :  { %1344 = vmatprep.subr.bf16.mxu1 %v1343_v63  ;;  %1348 = vmatprep.subr.bf16.mxu0 %v1347_v2 }
  0x58   :  { %1092 = vmatmul.mubr.f32.vlgmr.msra.gmra.mrb[0].mxu0 %v74_v45 }
  0x59   :  { %1094 = vmatprep.mubr.f32.mxu0 %v75_v47  ;;  %1346 = vmatpush3.bf16.msra.mxu1 %v1343_v63  ;;  %v1363_v63 = vpack.c.bf16 %v546_v62, %v545_v61 }
  0x5a   :  { %1350 = vmatpush3.bf16.msra.mxu0 %v1347_v2  ;;  %v1367_v2 = vpack.c.bf16 %v548_v1, %v547_v0 }
  0x5c   :  { %1095 = vmatmul.mubr.f32.gmra.mrb[2].mxu0 %v76_v48 }
  0x5d   :  { %1097 = vmatprep.mubr.f32.mxu0 %v77_v49 }
  0x60   :  { %1098 = vmatmul.mubr.f32.gmra.mrb[4].mxu0 %v78_v50 }
  0x61   :  { %1100 = vmatprep.mubr.f32.mxu0 %v79_v51 }
  0x64   :  { %1101 = vmatmul.mubr.f32.gmra.mrb[6].mxu0 %v80_v52  ;;  %v539_v52 = vld [vmem:[#allocation4 + $0x10] sm:$0xff] }
  0x65   :  { %1103 = vmatprep.mubr.f32.mxu0 %v81_v53  ;;  %v540_v53 = vld [vmem:[#allocation4 + $0x18] sm:$0xff] }
  0x68   :  { %1104 = vmatmul.mubr.f32.gmra.mrb[8].mxu0 %v82_v54  ;;  %v1351_v54 = vpack.c.bf16 %v540_v53, %v539_v52 }
  0x69   :  { %1106 = vmatprep.mubr.f32.mxu0 %v83_v55  ;;  %v541_v55 = vld [vmem:[#allocation4 + $0x20] sm:$0xff] }
  0x6a   :  { %1352 = vmatprep.subr.bf16.mxu0 %v1351_v54 }
  0x6b   :  { %1354 = vmatpush3.bf16.msra.mxu0 %v1351_v54 }
  0x6c   :  { %1107 = vmatmul.mubr.f32.gmra.mrb[10].mxu0 %v84_v56  ;;  %v542_v56 = vld [vmem:[#allocation4 + $0x28] sm:$0xff] }
  0x6d   :  { %1109 = vmatprep.mubr.f32.mxu0 %v85_v57  ;;  %v1355_v57 = vpack.c.bf16 %v542_v56, %v541_v55 }
  0x6f   :  { %1356 = vmatprep.subr.bf16.mxu0 %v1355_v57 }
  0x70   :  { %1110 = vmatmul.mubr.f32.gmra.mrb[12].mxu0 %v86_v58  ;;  %v543_v58 = vld [vmem:[#allocation4 + $0x30] sm:$0xff] }
  0x71   :  { %1112 = vmatprep.mubr.f32.mxu0 %v87_v59  ;;  %1358 = vmatpush3.bf16.msra.mxu0 %v1355_v57  ;;  %v544_v59 = vld [vmem:[#allocation4 + $0x38] sm:$0xff] }
  0x74   :  { %1113 = vmatmul.mubr.f32.gmra.mrb[14].mxu0 %v88_v60  ;;  %v1359_v60 = vpack.c.bf16 %v544_v59, %v543_v58 }
  0x76   :  { %1360 = vmatprep.subr.bf16.mxu0 %v1359_v60 }
  0x77   :  { %1362 = vmatpush3.bf16.msra.mxu0 %v1359_v60 }
  0x78   :  { %1364 = vmatprep.subr.bf16.mxu0 %v1363_v63 }
  0x7b   :  { %1366 = vmatpush3.bf16.msra.mxu0 %v1363_v63 }
  0x7c   :  { %1368 = vmatprep.subr.bf16.mxu0 %v1367_v2 }
  0x7f   :  { %1370 = vmatpush3.bf16.msra.mxu0 %v1367_v2 }
 0x12b   :  { %v1093_v4 = vpop.f32.mrb[0].mxu0 }
 0x12c   :  { %v184_v5 = vadd.f32 %v1093_v4, %v911_v3  ;;  %v178_v6 = vpop.f32.mrb[1].mxu0  ;;  %v550_v4 = vld [vmem:[#allocation4 + $0x68] sm:$0xff] }
 0x12d   :  { %v179_v7 = vadd.f32 %v911_v3, %v178_v6  ;;  %v551_v6 = vld [vmem:[#allocation4 + $0x70] sm:$0xff] }
 0x12e   :  { %v258_v10 = vmax.f32 %v184_v5, 0.0 }
 0x12f   :  { %v1096_v8 = vpop.f32.mrb[2].mxu0  ;;  %v257_v9 = vmax.f32 %v179_v7, 0.0  ;;  %v552_v7 = vld [vmem:[#allocation4 + $0x78] sm:$0xff] }
 0x130   :  { %v194_v11 = vadd.f32 %v1096_v8, %v911_v3  ;;  %v188_v12 = vpop.f32.mrb[3].mxu0  ;;  %v1375_v8 = vpack.c.bf16 %v552_v7, %v551_v6 }
 0x131   :  { %v189_v13 = vadd.f32 %v911_v3, %v188_v12  ;;  %1147 = vmatprep.mubr.f32.mxu1 %v257_v9  ;;  %v721_v9 = vld [vmem:[#allocation6] sm:$0xff] }
 0x132   :  { %1148 = vmatmul.mubr.f32.vlgmr.msra.gmra.mrb[0].mxu1 %v258_v10  ;;  %v260_v16 = vmax.f32 %v194_v11, 0.0  ;;  %v722_v10 = vld [vmem:[#allocation6 + $0x8] sm:$0xff]  ;;  %v723_v11 = vld [vmem:[#allocation6 + $0x10] sm:$0xff] }
 0x133   :  { %v259_v14 = vmax.f32 %v189_v13, 0.0  ;;  %v1099_v15 = vpop.f32.mrb[4].mxu0  ;;  %v1379_v12 = vpack.c.bf16 %v722_v10, %v721_v9  ;;  %v724_v13 = vld [vmem:[#allocation6 + $0x18] sm:$0xff] }
 0x134   :  { %v204_v17 = vadd.f32 %v1099_v15, %v911_v3  ;;  %v198_v18 = vpop.f32.mrb[5].mxu0  ;;  %v725_v15 = vld [vmem:[#allocation6 + $0x20] sm:$0xff] }
 0x135   :  { %v199_v19 = vadd.f32 %v911_v3, %v198_v18  ;;  %1150 = vmatprep.mubr.f32.mxu1 %v259_v14  ;;  %v1383_v14 = vpack.c.bf16 %v724_v13, %v723_v11  ;;  %1380 = vmatprep.subr.bf16.mxu1 %v1379_v12  ;;  %v727_v18 = vld [vmem:[#allocation6 + $0x30] sm:$0xff] }
 0x136   :  { %1151 = vmatmul.mubr.f32.gmra.mrb[2].mxu1 %v260_v16  ;;  %v262_v22 = vmax.f32 %v204_v17, 0.0  ;;  %v726_v16 = vld [vmem:[#allocation6 + $0x28] sm:$0xff] }
 0x137   :  { %v261_v20 = vmax.f32 %v199_v19, 0.0  ;;  %v1102_v21 = vpop.f32.mrb[6].mxu0  ;;  %1382 = vmatpush3.bf16.msra.mxu1 %v1379_v12  ;;  %v1387_v17 = vpack.c.bf16 %v726_v16, %v725_v15  ;;  %v728_v19 = vld [vmem:[#allocation6 + $0x38] sm:$0xff] }
 0x138   :  { %v214_v23 = vadd.f32 %v1102_v21, %v911_v3  ;;  %v208_v24 = vpop.f32.mrb[7].mxu0  ;;  %1384 = vmatprep.subr.bf16.mxu1 %v1383_v14  ;;  %v729_v21 = vld [vmem:[#allocation6 + $0x40] sm:$0xff] }
 0x139   :  { %v209_v25 = vadd.f32 %v911_v3, %v208_v24  ;;  %1153 = vmatprep.mubr.f32.mxu1 %v261_v20  ;;  %v1391_v20 = vpack.c.bf16 %v728_v19, %v727_v18  ;;  %v731_v24 = vld [vmem:[#allocation6 + $0x50] sm:$0xff] }
 0x13a   :  { %1154 = vmatmul.mubr.f32.gmra.mrb[4].mxu1 %v262_v22  ;;  %v264_v28 = vmax.f32 %v214_v23, 0.0  ;;  %v730_v22 = vld [vmem:[#allocation6 + $0x48] sm:$0xff] }
 0x13b   :  { %v263_v26 = vmax.f32 %v209_v25, 0.0  ;;  %v1105_v27 = vpop.f32.mrb[8].mxu0  ;;  %1386 = vmatpush3.bf16.msra.mxu1 %v1383_v14  ;;  %v1395_v23 = vpack.c.bf16 %v730_v22, %v729_v21  ;;  %v732_v25 = vld [vmem:[#allocation6 + $0x58] sm:$0xff] }
 0x13c   :  { %v224_v29 = vadd.f32 %v1105_v27, %v911_v3  ;;  %v218_v30 = vpop.f32.mrb[9].mxu0  ;;  %1388 = vmatprep.subr.bf16.mxu1 %v1387_v17  ;;  %v733_v27 = vld [vmem:[#allocation6 + $0x60] sm:$0xff] }
 0x13d   :  { %v219_v31 = vadd.f32 %v911_v3, %v218_v30  ;;  %1156 = vmatprep.mubr.f32.mxu1 %v263_v26  ;;  %v1399_v26 = vpack.c.bf16 %v732_v25, %v731_v24  ;;  %v1759_v30 = vld [vmem:[%s1835_s4] ss:$0 sm:$0xff] }
 0x13e   :  { %1157 = vmatmul.mubr.f32.gmra.mrb[6].mxu1 %v264_v28  ;;  %v266_v34 = vmax.f32 %v224_v29, 0.0  ;;  %v734_v28 = vld [vmem:[#allocation6 + $0x68] sm:$0xff] }
 0x13f   :  { %v265_v32 = vmax.f32 %v219_v31, 0.0  ;;  %v1108_v33 = vpop.f32.mrb[10].mxu0  ;;  %1390 = vmatpush3.bf16.msra.mxu1 %v1387_v17  ;;  %v1403_v29 = vpack.c.bf16 %v734_v28, %v733_v27 }
 0x140   :  { %v234_v35 = vadd.f32 %v1108_v33, %v911_v3  ;;  %v228_v36 = vpop.f32.mrb[11].mxu0  ;;  %1392 = vmatprep.subr.bf16.mxu1 %v1391_v20 }
 0x141   :  { %v229_v37 = vadd.f32 %v911_v3, %v228_v36  ;;  %1159 = vmatprep.mubr.f32.mxu1 %v265_v32 }
 0x142   :  { %1160 = vmatmul.mubr.f32.gmra.mrb[8].mxu1 %v266_v34  ;;  %v268_v40 = vmax.f32 %v234_v35, 0.0 }
 0x143   :  { %v267_v38 = vmax.f32 %v229_v37, 0.0  ;;  %v1111_v39 = vpop.f32.mrb[12].mxu0  ;;  %1394 = vmatpush3.bf16.msra.mxu1 %v1391_v20 }
 0x144   :  { %v244_v41 = vadd.f32 %v1111_v39, %v911_v3  ;;  %v238_v42 = vpop.f32.mrb[13].mxu0  ;;  %1396 = vmatprep.subr.bf16.mxu1 %v1395_v23 }
 0x145   :  { %v239_v43 = vadd.f32 %v911_v3, %v238_v42  ;;  %1162 = vmatprep.mubr.f32.mxu1 %v267_v38 }
 0x146   :  { %1163 = vmatmul.mubr.f32.gmra.mrb[10].mxu1 %v268_v40  ;;  %v270_v46 = vmax.f32 %v244_v41, 0.0 }
 0x147   :  { %v269_v44 = vmax.f32 %v239_v43, 0.0  ;;  %v1114_v45 = vpop.f32.mrb[14].mxu0  ;;  %1398 = vmatpush3.bf16.msra.mxu1 %v1395_v23 }
 0x148   :  { %v254_v47 = vadd.f32 %v1114_v45, %v911_v3  ;;  %v248_v48 = vpop.f32.mrb[15].mxu0  ;;  %1400 = vmatprep.subr.bf16.mxu1 %v1399_v26 }
 0x149   :  { %v249_v49 = vadd.f32 %v911_v3, %v248_v48  ;;  %1165 = vmatprep.mubr.f32.mxu1 %v269_v44  ;;  %v549_v3 = vld [vmem:[#allocation4 + $0x60] sm:$0xff] }
 0x14a   :  { %1166 = vmatmul.mubr.f32.gmra.mrb[12].mxu1 %v270_v46  ;;  %v272_v51 = vmax.f32 %v254_v47, 0.0  ;;  %v1371_v5 = vpack.c.bf16 %v550_v4, %v549_v3 }
 0x14b   :  { %v271_v50 = vmax.f32 %v249_v49, 0.0  ;;  %1402 = vmatpush3.bf16.msra.mxu1 %v1399_v26 }
 0x14c   :  { %1372 = vmatprep.subr.bf16.mxu0 %v1371_v5  ;;  %1404 = vmatprep.subr.bf16.mxu1 %v1403_v29 }
 0x14d   :  { %1168 = vmatprep.mubr.f32.mxu1 %v271_v50  ;;  %1374 = vmatpush3.bf16.msra.mxu0 %v1371_v5 }
 0x14e   :  { %1169 = vmatmul.mubr.f32.gmra.mrb[14].mxu1 %v272_v51  ;;  %1376 = vmatprep.subr.bf16.mxu0 %v1375_v8 }
 0x14f   :  { %1406 = vmatpush3.bf16.msra.mxu1 %v1403_v29 }
 0x151   :  { %1378 = vmatpush3.bf16.msra.mxu0 %v1375_v8 }
 0x205   :  { %v1149_v31 = vpop.f32.mrb[0].mxu1 }
 0x206   :  { %v368_v32 = vadd.f32 %v1149_v31, %v1759_v30  ;;  %v362_v33 = vpop.f32.mrb[1].mxu1 }
 0x207   :  { %v363_v34 = vadd.f32 %v1759_v30, %v362_v33 }
 0x208   :  { %v914_v35 = vmul.f32 -1.442695, %v368_v32 }
 0x209   :  { %v913_v36 = vmul.f32 -1.442695, %v363_v34  ;;  %v1152_v37 = vpop.f32.mrb[2].mxu1 }
 0x20a   :  { %1416 = vpow2.f32 %v914_v35  ;;  %v378_v38 = vadd.f32 %v1152_v37, %v1759_v30  ;;  %v372_v39 = vpop.f32.mrb[3].mxu1 }
 0x20b   :  { %1418 = vpow2.f32 %v913_v36  ;;  %v373_v40 = vadd.f32 %v1759_v30, %v372_v39 }
 0x20c   :  { %v916_v41 = vmul.f32 -1.442695, %v378_v38 }
 0x20d   :  { %v915_v42 = vmul.f32 -1.442695, %v373_v40  ;;  %v1155_v43 = vpop.f32.mrb[4].mxu1 }
 0x20e   :  { %1420 = vpow2.f32 %v916_v41  ;;  %v388_v44 = vadd.f32 %v1155_v43, %v1759_v30  ;;  %v382_v45 = vpop.f32.mrb[5].mxu1 }
 0x20f   :  { %1422 = vpow2.f32 %v915_v42  ;;  %v383_v46 = vadd.f32 %v1759_v30, %v382_v45 }
 0x210   :  { %v918_v47 = vmul.f32 -1.442695, %v388_v44 }
 0x211   :  { %v917_v48 = vmul.f32 -1.442695, %v383_v46  ;;  %v1158_v49 = vpop.f32.mrb[6].mxu1 }
 0x212   :  { %1424 = vpow2.f32 %v918_v47  ;;  %v398_v50 = vadd.f32 %v1158_v49, %v1759_v30  ;;  %v392_v51 = vpop.f32.mrb[7].mxu1 }
 0x213   :  { %1426 = vpow2.f32 %v917_v48  ;;  %v393_v52 = vadd.f32 %v1759_v30, %v392_v51 }
 0x214   :  { %v1417_v53 = vpop.eup %1416  ;;  %v920_v54 = vmul.f32 -1.442695, %v398_v50 }
 0x215   :  { %v1419_v55 = vpop.eup %1418  ;;  %v490_v56 = vadd.f32 1.0, %v1417_v53  ;;  %v919_v57 = vmul.f32 -1.442695, %v393_v52  ;;  %v1161_v58 = vpop.f32.mrb[8].mxu1 }
 0x216   :  { %v489_v59 = vadd.f32 1.0, %v1419_v55  ;;  %1428 = vpow2.f32 %v920_v54  ;;  %v408_v60 = vadd.f32 %v1161_v58, %v1759_v30  ;;  %v402_v61 = vpop.f32.mrb[9].mxu1 }
 0x217   :  { %1430 = vrcp.f32 %v490_v56  ;;  %v403_v62 = vadd.f32 %v1759_v30, %v402_v61 }
 0x218   :  { %v1421_v63 = vpop.eup %1420  ;;  %1432 = vrcp.f32 %v489_v59  ;;  %v922_v0 = vmul.f32 -1.442695, %v408_v60 }
 0x219   :  { %v1423_v1 = vpop.eup %1422  ;;  %v492_v2 = vadd.f32 1.0, %v1421_v63  ;;  %1434 = vpow2.f32 %v919_v57  ;;  %v921_v3 = vmul.f32 -1.442695, %v403_v62  ;;  %v1164_v4 = vpop.f32.mrb[10].mxu1  ;;  %v735_v63 = vld [vmem:[#allocation6 + $0x70] sm:$0xff] }
 0x21a   :  { %v491_v5 = vadd.f32 1.0, %v1423_v1  ;;  %1436 = vpow2.f32 %v922_v0  ;;  %v418_v6 = vadd.f32 %v1164_v4, %v1759_v30  ;;  %v412_v7 = vpop.f32.mrb[11].mxu1  ;;  %v736_v0 = vld [vmem:[#allocation6 + $0x78] sm:$0xff] }
 0x21b   :  { %1438 = vrcp.f32 %v492_v2  ;;  %v413_v8 = vadd.f32 %v1759_v30, %v412_v7  ;;  %v1407_v1 = vpack.c.bf16 %v736_v0, %v735_v63  ;;  %v929_v2 = vld [vmem:[%s1837_s6] ss:$0 sm:$0xff] }
 0x21c   :  { %v1425_v9 = vpop.eup %1424  ;;  %1440 = vrcp.f32 %v491_v5  ;;  %v924_v10 = vmul.f32 -1.442695, %v418_v6 }
 0x21d   :  { %v1427_v11 = vpop.eup %1426  ;;  %v494_v12 = vadd.f32 1.0, %v1425_v9  ;;  %1442 = vpow2.f32 %v921_v3  ;;  %v923_v13 = vmul.f32 -1.442695, %v413_v8  ;;  %v1167_v14 = vpop.f32.mrb[12].mxu1  ;;  %1408 = vmatprep.subr.bf16.mxu1 %v1407_v1 }
 0x21e   :  { %v493_v15 = vadd.f32 1.0, %v1427_v11  ;;  %1444 = vpow2.f32 %v924_v10  ;;  %v428_v16 = vadd.f32 %v1167_v14, %v1759_v30  ;;  %v422_v17 = vpop.f32.mrb[13].mxu1  ;;  %1410 = vmatpush3.bf16.msra.mxu1 %v1407_v1 }
 0x21f   :  { %1446 = vrcp.f32 %v494_v12  ;;  %v423_v18 = vadd.f32 %v1759_v30, %v422_v17 }
 0x220   :  { %v1429_v19 = vpop.eup %1428  ;;  %1448 = vrcp.f32 %v493_v15  ;;  %v926_v20 = vmul.f32 -1.442695, %v428_v16 }
 0x221   :  { %v1431_v21 = vpop.eup %1430  ;;  %1450 = vpow2.f32 %v923_v13  ;;  %v925_v22 = vmul.f32 -1.442695, %v423_v18  ;;  %v1170_v23 = vpop.f32.mrb[14].mxu1  ;;  %v496_v28 = vadd.f32 1.0, %v1429_v19 }
 0x222   :  { %v1433_v24 = vpop.eup %1432  ;;  %1452 = vpow2.f32 %v926_v20  ;;  %v438_v25 = vadd.f32 %v1170_v23, %v1759_v30  ;;  %v432_v26 = vpop.f32.mrb[15].mxu1 }
 0x223   :  { %v1435_v27 = vpop.eup %1434  ;;  %v433_v29 = vadd.f32 %v1759_v30, %v432_v26  ;;  %1203 = vmatprep.mubr.f32.mxu0 %v1433_v24  ;;  %1454 = vpow2.f32 %v925_v22 }
 0x224   :  { %v1437_v31 = vpop.eup %1436  ;;  %v495_v32 = vadd.f32 1.0, %v1435_v27  ;;  %v928_v33 = vmul.f32 -1.442695, %v438_v25  ;;  %1204 = vmatmul.mubr.f32.vlgmr.msra.gmra.mrb[16].mxu0 %v1431_v21 }
 0x225   :  { %v1439_v34 = vpop.eup %1438  ;;  %v927_v35 = vmul.f32 -1.442695, %v433_v29  ;;  %v498_v38 = vadd.f32 1.0, %v1437_v31 }
 0x226   :  { %v1441_v36 = vpop.eup %1440  ;;  %1456 = vrcp.f32 %v495_v32 }
 0x227   :  { %v1443_v37 = vpop.eup %1442  ;;  %1458 = vrcp.f32 %v496_v28  ;;  %1206 = vmatprep.mubr.f32.mxu0 %v1441_v36 }
 0x228   :  { %v1445_v39 = vpop.eup %1444  ;;  %v497_v40 = vadd.f32 1.0, %v1443_v37  ;;  %1460 = vpow2.f32 %v928_v33  ;;  %1207 = vmatmul.mubr.f32.gmra.mrb[18].mxu0 %v1439_v34 }
 0x229   :  { %v1447_v41 = vpop.eup %1446  ;;  %1462 = vpow2.f32 %v927_v35  ;;  %v500_v43 = vadd.f32 1.0, %v1445_v39 }
 0x22a   :  { %v1449_v30 = vpop.eup %1448  ;;  %1464 = vrcp.f32 %v497_v40 }
 0x22b   :  { %v1451_v42 = vpop.eup %1450  ;;  %1466 = vrcp.f32 %v498_v38  ;;  %1209 = vmatprep.mubr.f32.mxu0 %v1449_v30 }
 0x22c   :  { %v1453_v44 = vpop.eup %1452  ;;  %v499_v45 = vadd.f32 1.0, %v1451_v42  ;;  %1210 = vmatmul.mubr.f32.gmra.mrb[20].mxu0 %v1447_v41 }
 0x22d   :  { %v1455_v46 = vpop.eup %1454  ;;  %v502_v47 = vadd.f32 1.0, %v1453_v44 }
 0x22e   :  { %1468 = vrcp.f32 %v499_v45  ;;  %v501_v48 = vadd.f32 1.0, %v1455_v46 }
 0x22f   :  { %1470 = vrcp.f32 %v500_v43 }
 0x230   :  { %v1457_v49 = vpop.eup %1456  ;;  %1472 = vrcp.f32 %v501_v48 }
 0x231   :  { %v1459_v50 = vpop.eup %1458  ;;  %1212 = vmatprep.mubr.f32.mxu0 %v1457_v49  ;;  %1474 = vrcp.f32 %v502_v47 }
 0x232   :  { %v1461_v51 = vpop.eup %1460  ;;  %1213 = vmatmul.mubr.f32.gmra.mrb[22].mxu0 %v1459_v50 }
 0x233   :  { %v1463_v52 = vpop.eup %1462  ;;  %v504_v53 = vadd.f32 1.0, %v1461_v51  ;;  %v930_v51 = vld [vmem:[%s1839_s8] ss:$0 sm:$0xff] }
 0x234   :  { %v1465_v54 = vpop.eup %1464  ;;  %v503_v55 = vadd.f32 1.0, %v1463_v52 }
 0x235   :  { %v1467_v56 = vpop.eup %1466  ;;  %1215 = vmatprep.mubr.f32.mxu0 %v1465_v54 }
 0x236   :  { %1476 = vrcp.f32 %v503_v55  ;;  %1216 = vmatmul.mubr.f32.gmra.mrb[24].mxu0 %v1467_v56 }
 0x237   :  { %1478 = vrcp.f32 %v504_v53 }
 0x238   :  { %v1469_v57 = vpop.eup %1468 }
 0x239   :  { %v1471_v58 = vpop.eup %1470  ;;  %1218 = vmatprep.mubr.f32.mxu0 %v1469_v57 }
 0x23a   :  { %1219 = vmatmul.mubr.f32.gmra.mrb[26].mxu0 %v1471_v58  ;;  %v1473_v59 = vpop.eup %1472 }
 0x23b   :  { %1221 = vmatprep.mubr.f32.mxu0 %v1473_v59  ;;  %v1475_v60 = vpop.eup %1474 }
 0x23e   :  { %1222 = vmatmul.mubr.f32.gmra.mrb[28].mxu0 %v1475_v60 }
 0x240   :  { %v1477_v61 = vpop.eup %1476 }
 0x241   :  { %v1479_v62 = vpop.eup %1478  ;;  %1224 = vmatprep.mubr.f32.mxu0 %v1477_v61 }
 0x242   :  { %1225 = vmatmul.mubr.f32.gmra.mrb[30].mxu0 %v1479_v62 }
 0x2f7   :  { %v1205_v3 = vpop.f32.mrb[16].mxu0 }
 0x2f8   :  { %v632_v4 = vadd.f32 %v1205_v3, %v929_v2  ;;  %v626_v5 = vpop.f32.mrb[17].mxu0 }
 0x2f9   :  { %v627_v6 = vadd.f32 %v929_v2, %v626_v5 }
 0x2fa   :  { %v706_v9 = vmax.f32 %v632_v4, 0.0 }
 0x2fb   :  { %v705_v7 = vmax.f32 %v627_v6, 0.0  ;;  %v1208_v8 = vpop.f32.mrb[18].mxu0 }
 0x2fc   :  { %v642_v10 = vadd.f32 %v1208_v8, %v929_v2  ;;  %v636_v11 = vpop.f32.mrb[19].mxu0 }
 0x2fd   :  { %v637_v12 = vadd.f32 %v929_v2, %v636_v11  ;;  %1259 = vmatprep.mubr.f32.mxu1 %v705_v7 }
 0x2fe   :  { %1260 = vmatmul.mubr.f32.vlgmr.msra.gmra.mrb[16].mxu1 %v706_v9  ;;  %v708_v15 = vmax.f32 %v642_v10, 0.0 }
 0x2ff   :  { %v707_v13 = vmax.f32 %v637_v12, 0.0  ;;  %v1211_v14 = vpop.f32.mrb[20].mxu0 }
 0x300   :  { %v652_v16 = vadd.f32 %v1211_v14, %v929_v2  ;;  %v646_v17 = vpop.f32.mrb[21].mxu0 }
 0x301   :  { %v647_v18 = vadd.f32 %v929_v2, %v646_v17  ;;  %1262 = vmatprep.mubr.f32.mxu1 %v707_v13 }
 0x302   :  { %1263 = vmatmul.mubr.f32.gmra.mrb[18].mxu1 %v708_v15  ;;  %v710_v20 = vmax.f32 %v652_v16, 0.0 }
 0x303   :  { %v709_v19 = vmax.f32 %v647_v18, 0.0 }
 0x305   :  { %v1214_v21 = vpop.f32.mrb[22].mxu0  ;;  %1265 = vmatprep.mubr.f32.mxu1 %v709_v19 }
 0x306   :  { %v662_v22 = vadd.f32 %v1214_v21, %v929_v2  ;;  %v656_v23 = vpop.f32.mrb[23].mxu0  ;;  %1266 = vmatmul.mubr.f32.gmra.mrb[20].mxu1 %v710_v20 }
 0x307   :  { %v657_v24 = vadd.f32 %v929_v2, %v656_v23 }
 0x308   :  { %v712_v27 = vmax.f32 %v662_v22, 0.0 }
 0x309   :  { %v711_v25 = vmax.f32 %v657_v24, 0.0  ;;  %v1217_v26 = vpop.f32.mrb[24].mxu0 }
 0x30a   :  { %v672_v28 = vadd.f32 %v1217_v26, %v929_v2  ;;  %v666_v29 = vpop.f32.mrb[25].mxu0 }
 0x30b   :  { %v667_v31 = vadd.f32 %v929_v2, %v666_v29  ;;  %1268 = vmatprep.mubr.f32.mxu1 %v711_v25 }
 0x30c   :  { %1269 = vmatmul.mubr.f32.gmra.mrb[22].mxu1 %v712_v27  ;;  %v714_v34 = vmax.f32 %v672_v28, 0.0 }
 0x30d   :  { %v713_v32 = vmax.f32 %v667_v31, 0.0  ;;  %v1220_v33 = vpop.f32.mrb[26].mxu0 }
 0x30e   :  { %v682_v35 = vadd.f32 %v1220_v33, %v929_v2  ;;  %v676_v36 = vpop.f32.mrb[27].mxu0 }
 0x30f   :  { %v677_v37 = vadd.f32 %v929_v2, %v676_v36  ;;  %1271 = vmatprep.mubr.f32.mxu1 %v713_v32 }
 0x310   :  { %1272 = vmatmul.mubr.f32.gmra.mrb[24].mxu1 %v714_v34  ;;  %v716_v40 = vmax.f32 %v682_v35, 0.0 }
 0x311   :  { %v715_v38 = vmax.f32 %v677_v37, 0.0  ;;  %v1223_v39 = vpop.f32.mrb[28].mxu0 }
 0x312   :  { %v692_v41 = vadd.f32 %v1223_v39, %v929_v2  ;;  %v686_v30 = vpop.f32.mrb[29].mxu0 }
 0x313   :  { %v687_v42 = vadd.f32 %v929_v2, %v686_v30  ;;  %1274 = vmatprep.mubr.f32.mxu1 %v715_v38 }
 0x314   :  { %1275 = vmatmul.mubr.f32.gmra.mrb[26].mxu1 %v716_v40  ;;  %v718_v45 = vmax.f32 %v692_v41, 0.0 }
 0x315   :  { %v717_v43 = vmax.f32 %v687_v42, 0.0  ;;  %v1226_v44 = vpop.f32.mrb[30].mxu0 }
 0x316   :  { %v702_v46 = vadd.f32 %v1226_v44, %v929_v2  ;;  %v696_v47 = vpop.f32.mrb[31].mxu0 }
 0x317   :  { %v697_v48 = vadd.f32 %v929_v2, %v696_v47  ;;  %1277 = vmatprep.mubr.f32.mxu1 %v717_v43 }
 0x318   :  { %1278 = vmatmul.mubr.f32.gmra.mrb[28].mxu1 %v718_v45  ;;  %v720_v50 = vmax.f32 %v702_v46, 0.0 }
 0x319   :  { %v719_v49 = vmax.f32 %v697_v48, 0.0 }
 0x31b   :  { %1280 = vmatprep.mubr.f32.mxu1 %v719_v49 }
 0x31c   :  { %1281 = vmatmul.mubr.f32.gmra.mrb[30].mxu1 %v720_v50 }
 0x3d1   :  { %v1261_v52 = vpop.f32.mrb[16].mxu1 }
 0x3d2   :  { %v816_v53 = vadd.f32 %v1261_v52, %v930_v51  ;;  %v810_v54 = vpop.f32.mrb[17].mxu1 }
 0x3d3   :  { %v811_v55 = vadd.f32 %v930_v51, %v810_v54 }
 0x3d4   :  { %890 = vst [vmem:[%s1840_s9 + $0x8] sm:$0xff] %v816_v53 }
 0x3d5   :  { %889 = vst [vmem:[%s1840_s9] sm:$0xff] %v811_v55  ;;  %v1264_v56 = vpop.f32.mrb[18].mxu1 }
 0x3d6   :  { %v826_v57 = vadd.f32 %v1264_v56, %v930_v51  ;;  %v820_v58 = vpop.f32.mrb[19].mxu1 }
 0x3d7   :  { %v821_v59 = vadd.f32 %v930_v51, %v820_v58 }
 0x3d8   :  { %892 = vst [vmem:[%s1840_s9 + $0x18] sm:$0xff] %v826_v57 }
 0x3d9   :  { %891 = vst [vmem:[%s1840_s9 + $0x10] sm:$0xff] %v821_v59  ;;  %v1267_v60 = vpop.f32.mrb[20].mxu1 }
 0x3da   :  { %v836_v61 = vadd.f32 %v1267_v60, %v930_v51  ;;  %v830_v62 = vpop.f32.mrb[21].mxu1 }
 0x3db   :  { %v831_v63 = vadd.f32 %v930_v51, %v830_v62 }
 0x3dc   :  { %894 = vst [vmem:[%s1840_s9 + $0x28] sm:$0xff] %v836_v61 }
 0x3dd   :  { %893 = vst [vmem:[%s1840_s9 + $0x20] sm:$0xff] %v831_v63 }
 0x3df   :  { %v1270_v0 = vpop.f32.mrb[22].mxu1 }
 0x3e0   :  { %v846_v1 = vadd.f32 %v1270_v0, %v930_v51  ;;  %v840_v2 = vpop.f32.mrb[23].mxu1 }
 0x3e1   :  { %v841_v3 = vadd.f32 %v930_v51, %v840_v2 }
 0x3e2   :  { %896 = vst [vmem:[%s1840_s9 + $0x38] sm:$0xff] %v846_v1 }
 0x3e3   :  { %895 = vst [vmem:[%s1840_s9 + $0x30] sm:$0xff] %v841_v3  ;;  %v1273_v4 = vpop.f32.mrb[24].mxu1 }
 0x3e4   :  { %v856_v5 = vadd.f32 %v1273_v4, %v930_v51  ;;  %v850_v6 = vpop.f32.mrb[25].mxu1 }
 0x3e5   :  { %v851_v7 = vadd.f32 %v930_v51, %v850_v6 }
 0x3e6   :  { %898 = vst [vmem:[%s1840_s9 + $0x48] sm:$0xff] %v856_v5 }
 0x3e7   :  { %897 = vst [vmem:[%s1840_s9 + $0x40] sm:$0xff] %v851_v7  ;;  %v1276_v8 = vpop.f32.mrb[26].mxu1 }
 0x3e8   :  { %v866_v9 = vadd.f32 %v1276_v8, %v930_v51  ;;  %v860_v10 = vpop.f32.mrb[27].mxu1 }
 0x3e9   :  { %v861_v11 = vadd.f32 %v930_v51, %v860_v10 }
 0x3ea   :  { %900 = vst [vmem:[%s1840_s9 + $0x58] sm:$0xff] %v866_v9 }
 0x3eb   :  { %899 = vst [vmem:[%s1840_s9 + $0x50] sm:$0xff] %v861_v11  ;;  %v1279_v12 = vpop.f32.mrb[28].mxu1 }
 0x3ec   :  { %v876_v13 = vadd.f32 %v1279_v12, %v930_v51  ;;  %v870_v14 = vpop.f32.mrb[29].mxu1 }
 0x3ed   :  { %v871_v15 = vadd.f32 %v930_v51, %v870_v14 }
 0x3ee   :  { %902 = vst [vmem:[%s1840_s9 + $0x68] sm:$0xff] %v876_v13 }
 0x3ef   :  { %901 = vst [vmem:[%s1840_s9 + $0x60] sm:$0xff] %v871_v15  ;;  %v1282_v16 = vpop.f32.mrb[30].mxu1 }
 0x3f0   :  { %v886_v17 = vadd.f32 %v1282_v16, %v930_v51  ;;  %v880_v18 = vpop.f32.mrb[31].mxu1 }
 0x3f1   :  { %v881_v19 = vadd.f32 %v930_v51, %v880_v18 }
 0x3f2   :  { %904 = vst [vmem:[%s1840_s9 + $0x78] sm:$0xff] %v886_v17 }
 0x3f3   :  { %903 = vst [vmem:[%s1840_s9 + $0x70] sm:$0xff] %v881_v19 }
 0x3f4   :  { %909 = vsyncpa [#allocation3], 1 }
 0x3f5   :  { %910 = vsyncpa [#allocation5], 1 }

</bundles_post_ra>
